<compile_context>
chip_gen: v6e
topology: v6e:2x2x1
jax: 0.10.0
libtpu: 0.0.40
codegen_flags: <defaults>
</compile_context>

<pallas_src>
import functools

import jax
import jax.numpy as jnp
from jax.experimental import pallas as pl
from jax.experimental.pallas import tpu as pltpu


def _round_up(x, m):
    return (x + m - 1) // m * m


# ----------------------------------------------------------------------------
# Fused Pallas kernel: text proj + K-tiled image proj + classifier + CE loss
# ----------------------------------------------------------------------------
def _fused_clip_head_kernel(num_labels,
                            txt_ref, wtxt_ref, img_ref, wimg_ref,
                            wcls_ref, b_ref, lab_ref,
                            logits_ref, loss_ref,
                            acc_ref):
    k = pl.program_id(0)

    @pl.when(k == 0)
    def _():
        acc_ref[...] = jnp.zeros_like(acc_ref)

    # Image projection partial sum: [B, tk] x [Dout, tk], contracting the last
    # dim of both operands (no transpose needed before the MXU push).
    acc_ref[...] += jax.lax.dot_general(
        img_ref[...], wimg_ref[...],
        dimension_numbers=(((1,), (1,)), ((), ())),
        preferred_element_type=jnp.float32)

    @pl.when(k == pl.num_programs(0) - 1)
    def _():
        outdim = acc_ref.shape[1]

        # Text projection (weights are resident across the grid; tiny K).
        text_emb = jax.lax.dot_general(
            txt_ref[...], wtxt_ref[...],
            dimension_numbers=(((1,), (1,)), ((), ())),
            preferred_element_type=jnp.float32)          # [B_pad, outdim] f32
        image_emb = acc_ref[...]                          # [B_pad, outdim] f32

        # Classifier: logits = concat([text, image], dim=1) @ W_cls.T + b
        #   == text @ W_cls[:, :outdim].T + image @ W_cls[:, outdim:].T + b
        # (static ref slices: no extra HBM copy of the weight halves)
        w_t = wcls_ref[:, pl.ds(0, outdim)]               # [N_pad, outdim]
        w_i = wcls_ref[:, pl.ds(outdim, outdim)]          # [N_pad, outdim]
        logits = (
            jax.lax.dot_general(text_emb.astype(w_t.dtype), w_t,
                                dimension_numbers=(((1,), (1,)), ((), ())),
                                preferred_element_type=jnp.float32)
            + jax.lax.dot_general(image_emb.astype(w_i.dtype), w_i,
                                  dimension_numbers=(((1,), (1,)), ((), ())),
                                  preferred_element_type=jnp.float32)
            + b_ref[...]
        )                                                 # [B_pad, N_pad] f32

        # Mask padded class columns so they never affect the softmax.
        Bp, Np = logits.shape
        col = jax.lax.broadcasted_iota(jnp.int32, (Bp, Np), 1)
        masked = jnp.where(col < num_labels, logits, jnp.float32(-1e30))
        logits_ref[...] = masked

        # CrossEntropyLoss: mean over non-ignored samples (ignore_index=-100),
        # numerically stable log-softmax. Padded batch rows carry label -100.
        m = jnp.max(masked, axis=-1, keepdims=True)
        z = masked - m
        lse = jnp.log(jnp.sum(jnp.exp(z), axis=-1, keepdims=True))
        logp = z - lse                                            # [B_pad, N_pad]
        labels = lab_ref[...]                                     # [B_pad, 1]
        valid = labels != -100                                    # [B_pad, 1]
        onehot = (col == labels).astype(jnp.float32)              # [B_pad, N_pad]
        nll = -jnp.sum(onehot * logp, axis=-1, keepdims=True)     # [B_pad, 1]
        nll = jnp.where(valid, nll, 0.0)
        count = jnp.sum(valid.astype(jnp.float32), axis=0, keepdims=True)  # [1, 1]
        loss = jnp.sum(nll, axis=0, keepdims=True) / count                 # [1, 1]
        loss_ref[...] = jnp.broadcast_to(loss, loss_ref.shape)    # lane-dense slab


# ----------------------------------------------------------------------------
# pallas_call wrapper: padding / bf16 casting / tiling decisions
# ----------------------------------------------------------------------------
def clip_fused_projections_and_head(pooled_text, img_flat, w_text_proj,
                                    w_img_proj, w_cls, b_cls, labels, *, tk=None):
    """Fused CLIP projections + classifier + cross-entropy.

    pooled_text: [B, d_text] f32       w_text_proj: [outdim, d_text]
    img_flat:    [B, Din]    f32       w_img_proj:  [outdim, Din]
    w_cls: [num_labels, 2*outdim]      b_cls: [num_labels]
    labels: [B] int (ignore_index=-100 honoured)
    returns (logits [B, num_labels] f32, loss [] f32)
    """
    B, d_text = pooled_text.shape
    Din = img_flat.shape[1]
    outdim = w_text_proj.shape[0]
    num_labels = w_cls.shape[0]

    B_pad = _round_up(B, 8)                    # sublane multiple
    N_pad = _round_up(num_labels, 128)         # lane-dense logits / bias
    if tk is None:
        # Small problems: one-or-few K steps; real CLIP (Din=150528): tk=2048
        # keeps each double-buffered bf16 weight tile ~outdim*2048*2B (~2 MiB at
        # outdim=512), well inside v7x's 64 MiB VMEM.
        tk = 256 if Din <= 4096 else 2048
    Din_pad = _round_up(Din, tk)
    nk = Din_pad // tk

    # bf16 streaming operands (halves HBM bytes, native MXU path); f32 accumulate.
    txt = jnp.zeros((B_pad, d_text), jnp.bfloat16).at[:B].set(
        pooled_text.astype(jnp.bfloat16))
    img = jnp.zeros((B_pad, Din_pad), jnp.bfloat16).at[:B, :Din].set(
        img_flat.astype(jnp.bfloat16))
    wtxt = w_text_proj.astype(jnp.bfloat16)
    wimg = jnp.zeros((outdim, Din_pad), jnp.bfloat16).at[:, :Din].set(
        w_img_proj.astype(jnp.bfloat16))
    wcls = jnp.zeros((N_pad, 2 * outdim), jnp.bfloat16).at[:num_labels].set(
        w_cls.astype(jnp.bfloat16))
    bcls = jnp.zeros((1, N_pad), jnp.float32).at[0, :num_labels].set(
        b_cls.astype(jnp.float32))
    lab = jnp.full((B_pad, 1), -100, jnp.int32).at[:B, 0].set(
        labels.astype(jnp.int32))
    # TODO(synk): labels could live in SMEM via scalar prefetch; kept as a tiny
    # VMEM block for robust vectorized one-hot construction.

    kernel = functools.partial(_fused_clip_head_kernel, num_labels)

    logits_pad, loss_vec = pl.pallas_call(
        kernel,
        out_shape=(
            jax.ShapeDtypeStruct((B_pad, N_pad), jnp.float32),
            jax.ShapeDtypeStruct((1, 128), jnp.float32),
        ),
        grid_spec=pltpu.PrefetchScalarGridSpec(
            num_scalar_prefetch=0,
            grid=(nk,),                                      # K reduction, last & only axis
            in_specs=[
                pl.BlockSpec((B_pad, d_text), lambda k: (0, 0)),     # pooled text (resident)
                pl.BlockSpec((outdim, d_text), lambda k: (0, 0)),    # text proj W (resident)
                pl.BlockSpec((B_pad, tk), lambda k: (0, k)),         # image acts, K-tiled
                pl.BlockSpec((outdim, tk), lambda k: (0, k)),        # image proj W, K-tiled
                pl.BlockSpec((N_pad, 2 * outdim), lambda k: (0, 0)), # classifier W (resident)
                pl.BlockSpec((1, N_pad), lambda k: (0, 0)),          # classifier bias
                pl.BlockSpec((B_pad, 1), lambda k: (0, 0)),          # labels
            ],
            out_specs=(
                pl.BlockSpec((B_pad, N_pad), lambda k: (0, 0)),      # logits (lane-dense)
                pl.BlockSpec((1, 128), lambda k: (0, 0)),            # loss slab
            ),
            scratch_shapes=[pltpu.VMEM((B_pad, outdim), jnp.float32)],
        ),
        compiler_params=pltpu.CompilerParams(
            dimension_semantics=("arbitrary",),              # reduction axis
            vmem_limit_bytes=48 * 1024 * 1024,               # headroom on all gens (v7x=64MiB)
        ),
    )(txt, wtxt, img, wimg, wcls, bcls, lab)

    return logits_pad[:B, :num_labels], loss_vec[0, 0]


# ----------------------------------------------------------------------------
# Model glue (plain JAX): synthetic CLIP backbone + full forward
# ----------------------------------------------------------------------------
def clip_classification_forward(params, input_ids, attention_mask,
                                pixel_values, labels):
    # TODO(synk): the pretrained HF CLIP transformer stack needs a checkpoint; a
    # deterministic token-embedding + masked-mean-pool stand-in produces the
    # pooled text features and last_hidden_state of matching shapes.
    tok = params["tok_emb"][input_ids]                                  # [B, L, Dt]
    mask = attention_mask[..., None].astype(jnp.float32)                # [B, L, 1]
    pooled_text = (tok * mask).sum(axis=1) / jnp.clip(mask.sum(axis=1), 1.0)

    B = pixel_values.shape[0]
    img_flat = pixel_values.reshape(B, -1)                              # NCHW row-major flatten

    # nn.Dropout(0.1) -> identity in eval mode (deterministic forward).
    logits, loss = clip_fused_projections_and_head(
        pooled_text, img_flat,
        params["w_text_proj"], params["w_img_proj"],
        params["w_cls"], params["b_cls"], labels)

    # Mirrors SequenceClassifierOutput(loss, logits, hidden_states)
    return {"loss": loss, "logits": logits, "hidden_states": tok}


# ----------------------------------------------------------------------------
# Deterministic parameter init + example run
# ----------------------------------------------------------------------------
def init_params(key, vocab, d_text, c, h, w, outdim, num_labels):
    ks = jax.random.split(key, 5)
    d_img = c * h * w
    return {
        "tok_emb":     jax.random.normal(ks[0], (vocab, d_text), jnp.float32) * 0.02,
        "w_text_proj": jax.random.normal(ks[1], (outdim, d_text), jnp.float32) * 0.05,
        "w_img_proj":  jax.random.normal(ks[2], (outdim, d_img), jnp.float32) * 0.02,
        "w_cls":       jax.random.normal(ks[3], (num_labels, 2 * outdim), jnp.float32) * 0.05,
        "b_cls":       jnp.zeros((num_labels,), jnp.float32),
    }


if __name__ == "__main__":
    # Small shapes consistent with the module's forward.
    B, L, VOCAB, D_TEXT = 2, 8, 32, 16
    C, H, W = 3, 16, 16
    OUTDIM, NUM_LABELS = 64, 4

    root = jax.random.PRNGKey(0)
    kp, k1, k2, k3 = jax.random.split(root, 4)

    params = init_params(kp, VOCAB, D_TEXT, C, H, W, OUTDIM, NUM_LABELS)

    input_ids = jax.random.randint(k1, (B, L), 0, VOCAB, dtype=jnp.int32)
    attention_mask = jnp.ones((B, L), jnp.int32).at[1, L // 2:].set(0)
    pixel_values = jax.random.normal(k2, (B, C, H, W), jnp.float32)   # NCHW
    labels = jax.random.randint(k3, (B,), 0, NUM_LABELS, dtype=jnp.int32)

    out = clip_classification_forward(params, input_ids, attention_mask,
                                      pixel_values, labels)
    jax.block_until_ready(out)

    assert out["logits"].shape == (B, NUM_LABELS)
    assert out["hidden_states"].shape == (B, L, D_TEXT)
    assert out["loss"].shape == ()
    assert bool(jnp.isfinite(out["loss"]))
    print("KERNEL_OK")
</pallas_src>

<mosaic_0001>
module attributes {stable_mosaic.version = 11 : i64} {
  func.func @_fused_clip_head_kernel(%arg0: i32, %arg1: memref<8x16xbf16, #tpu.memory_space<vmem>>, %arg2: memref<64x16xbf16, #tpu.memory_space<vmem>>, %arg3: memref<8x256xbf16, #tpu.memory_space<vmem>>, %arg4: memref<64x256xbf16, #tpu.memory_space<vmem>>, %arg5: memref<128x128xbf16, #tpu.memory_space<vmem>>, %arg6: memref<1x128xf32, #tpu.memory_space<vmem>>, %arg7: memref<8x1xi32, #tpu.memory_space<vmem>>, %arg8: memref<8x128xf32, #tpu.memory_space<vmem>>, %arg9: memref<1x128xf32, #tpu.memory_space<vmem>>, %arg10: memref<8x64xf32, #tpu.memory_space<vmem>>) attributes {dimension_semantics = [#tpu.dimension_semantics<arbitrary>], iteration_bounds = array<i64: 3>, scalar_prefetch = 0 : i64, scratch_operands = 1 : i64, tpu.core_type = #tpu.core_type<tc>, window_params = [{pipeline_mode = #tpu.pipeline_mode<synchronous>, transform_indices = @transform_0, window_bounds = array<i64: 8, 16>}, {pipeline_mode = #tpu.pipeline_mode<synchronous>, transform_indices = @transform_1, window_bounds = array<i64: 64, 16>}, {transform_indices = @transform_2, window_bounds = array<i64: 8, 256>}, {transform_indices = @transform_3, window_bounds = array<i64: 64, 256>}, {pipeline_mode = #tpu.pipeline_mode<synchronous>, transform_indices = @transform_4, window_bounds = array<i64: 128, 128>}, {pipeline_mode = #tpu.pipeline_mode<synchronous>, transform_indices = @transform_5, window_bounds = array<i64: 1, 128>}, {pipeline_mode = #tpu.pipeline_mode<synchronous>, transform_indices = @transform_6, window_bounds = array<i64: 8, 1>}, {pipeline_mode = #tpu.pipeline_mode<synchronous>, transform_indices = @transform_7, window_bounds = array<i64: 8, 128>}, {pipeline_mode = #tpu.pipeline_mode<synchronous>, transform_indices = @transform_8, window_bounds = array<i64: 1, 128>}]} {
    %c0_i32 = arith.constant 0 : i32
    %0 = arith.cmpi eq, %arg0, %c0_i32 : i32
    %1 = arith.extui %0 : i1 to i32
    %c0_i32_0 = arith.constant 0 : i32
    %2 = arith.cmpi ne, %1, %c0_i32_0 : i32
    scf.if %2 {
      %cst_9 = arith.constant 0.000000e+00 : f32
      %12 = vector.broadcast %cst_9 : f32 to vector<8x64xf32>
      %c0_10 = arith.constant 0 : index
      %c0_11 = arith.constant 0 : index
      %13 = vector.load %arg10[%c0_10, %c0_11] : memref<8x64xf32, #tpu.memory_space<vmem>>, vector<8x64xf32>
      tpu.vector_store %arg10[%c0_10, %c0_11], %12 {strides = array<i32>} : memref<8x64xf32, #tpu.memory_space<vmem>>, vector<8x64xf32>,
    } else {
    }
    %c0 = arith.constant 0 : index
    %c0_1 = arith.constant 0 : index
    %3 = vector.load %arg10[%c0, %c0_1] : memref<8x64xf32, #tpu.memory_space<vmem>>, vector<8x64xf32>
    %c0_2 = arith.constant 0 : index
    %c0_3 = arith.constant 0 : index
    %4 = vector.load %arg3[%c0_2, %c0_3] : memref<8x256xbf16, #tpu.memory_space<vmem>>, vector<8x256xbf16>
    %c0_4 = arith.constant 0 : index
    %c0_5 = arith.constant 0 : index
    %5 = vector.load %arg4[%c0_4, %c0_5] : memref<64x256xbf16, #tpu.memory_space<vmem>>, vector<64x256xbf16>
    %cst = arith.constant dense<0.000000e+00> : vector<8x64xf32>
    %6 = tpu.matmul %4, %5, %cst {dimension_numbers = #tpu.dot_dimension_numbers<[1], [1], [0], [0], [0, 0, 1, 0], [], []>} : vector<8x256xbf16>, vector<64x256xbf16>, vector<8x64xf32> -> vector<8x64xf32>
    %7 = arith.addf %3, %6 : vector<8x64xf32>
    %c0_6 = arith.constant 0 : index
    %c0_7 = arith.constant 0 : index
    %8 = vector.load %arg10[%c0_6, %c0_7] : memref<8x64xf32, #tpu.memory_space<vmem>>, vector<8x64xf32>
    tpu.vector_store %arg10[%c0_6, %c0_7], %7 {strides = array<i32>} : memref<8x64xf32, #tpu.memory_space<vmem>>, vector<8x64xf32>,
    %c2_i32 = arith.constant 2 : i32
    %9 = arith.cmpi eq, %arg0, %c2_i32 : i32
    %10 = arith.extui %9 : i1 to i32
    %c0_i32_8 = arith.constant 0 : i32
    %11 = arith.cmpi ne, %10, %c0_i32_8 : i32
    scf.if %11 {
      %c0_9 = arith.constant 0 : index
      %c0_10 = arith.constant 0 : index
      %12 = vector.load %arg1[%c0_9, %c0_10] : memref<8x16xbf16, #tpu.memory_space<vmem>>, vector<8x16xbf16>
      %c0_11 = arith.constant 0 : index
      %c0_12 = arith.constant 0 : index
      %13 = vector.load %arg2[%c0_11, %c0_12] : memref<64x16xbf16, #tpu.memory_space<vmem>>, vector<64x16xbf16>
      %cst_13 = arith.constant dense<0.000000e+00> : vector<8x64xf32>
      %14 = tpu.matmul %12, %13, %cst_13 {dimension_numbers = #tpu.dot_dimension_numbers<[1], [1], [0], [0], [0, 0, 1, 0], [], []>} : vector<8x16xbf16>, vector<64x16xbf16>, vector<8x64xf32> -> vector<8x64xf32>
      %c0_14 = arith.constant 0 : index
      %c0_15 = arith.constant 0 : index
      %15 = vector.load %arg10[%c0_14, %c0_15] : memref<8x64xf32, #tpu.memory_space<vmem>>, vector<8x64xf32>
      %c0_16 = arith.constant 0 : index
      %c0_17 = arith.constant 0 : index
      %16 = vector.load %arg5[%c0_16, %c0_17] : memref<128x128xbf16, #tpu.memory_space<vmem>>, vector<128x64xbf16>
      %c0_18 = arith.constant 0 : index
      %c64 = arith.constant 64 : index
      %17 = vector.load %arg5[%c0_18, %c64] : memref<128x128xbf16, #tpu.memory_space<vmem>>, vector<128x64xbf16>
      %18 = arith.truncf %14 : vector<8x64xf32> to vector<8x64xbf16>
      %cst_19 = arith.constant dense<0.000000e+00> : vector<8x128xf32>
      %19 = tpu.matmul %18, %16, %cst_19 {dimension_numbers = #tpu.dot_dimension_numbers<[1], [1], [0], [0], [0, 0, 1, 0], [], []>} : vector<8x64xbf16>, vector<128x64xbf16>, vector<8x128xf32> -> vector<8x128xf32>
      %20 = arith.truncf %15 : vector<8x64xf32> to vector<8x64xbf16>
      %cst_20 = arith.constant dense<0.000000e+00> : vector<8x128xf32>
      %21 = tpu.matmul %20, %17, %cst_20 {dimension_numbers = #tpu.dot_dimension_numbers<[1], [1], [0], [0], [0, 0, 1, 0], [], []>} : vector<8x64xbf16>, vector<128x64xbf16>, vector<8x128xf32> -> vector<8x128xf32>
      %22 = arith.addf %19, %21 : vector<8x128xf32>
      %c0_21 = arith.constant 0 : index
      %c0_22 = arith.constant 0 : index
      %23 = vector.load %arg6[%c0_21, %c0_22] : memref<1x128xf32, #tpu.memory_space<vmem>>, vector<1x128xf32>
      %24 = vector.broadcast %23 : vector<1x128xf32> to vector<8x128xf32>
      %25 = arith.addf %22, %24 : vector<8x128xf32>
      %26 = tpu.iota {dimensions = array<i32: 1>} : vector<8x128xi32>
      %c4_i32 = arith.constant 4 : i32
      %27 = vector.broadcast %c4_i32 : i32 to vector<8x128xi32>
      %28 = arith.cmpi slt, %26, %27 : vector<8x128xi32>
      %cst_23 = arith.constant -1.000000e+30 : f32
      %29 = vector.broadcast %cst_23 : f32 to vector<8x128xf32>
      %30 = arith.select %28, %25, %29 : vector<8x128xi1>, vector<8x128xf32>
      %c0_24 = arith.constant 0 : index
      %c0_25 = arith.constant 0 : index
      %31 = vector.load %arg8[%c0_24, %c0_25] : memref<8x128xf32, #tpu.memory_space<vmem>>, vector<8x128xf32>
      tpu.vector_store %arg8[%c0_24, %c0_25], %30 {strides = array<i32>} : memref<8x128xf32, #tpu.memory_space<vmem>>, vector<8x128xf32>,
      %cst_26 = arith.constant dense<0xFF800000> : vector<8xf32>
      %32 = vector.multi_reduction <maximumf>, %30, %cst_26 [1] : vector<8x128xf32> to vector<8xf32>
      %33 = vector.shape_cast %32 : vector<8xf32> to vector<8x1xf32>
      %34 = vector.broadcast %33 : vector<8x1xf32> to vector<8x128xf32>
      %35 = arith.subf %30, %34 : vector<8x128xf32>
      %36 = math.exp %35 : vector<8x128xf32>
      %cst_27 = arith.constant dense<0.000000e+00> : vector<8xf32>
      %37 = vector.multi_reduction <add>, %36, %cst_27 [1] : vector<8x128xf32> to vector<8xf32>
      %38 = vector.shape_cast %37 : vector<8xf32> to vector<8x1xf32>
      %39 = math.log %38 : vector<8x1xf32>
      %40 = vector.broadcast %39 : vector<8x1xf32> to vector<8x128xf32>
      %41 = arith.subf %35, %40 : vector<8x128xf32>
      %c0_28 = arith.constant 0 : index
      %c0_29 = arith.constant 0 : index
      %42 = vector.load %arg7[%c0_28, %c0_29] : memref<8x1xi32, #tpu.memory_space<vmem>>, vector<8x1xi32>
      %c-100_i32 = arith.constant -100 : i32
      %43 = vector.broadcast %c-100_i32 : i32 to vector<8x1xi32>
      %44 = arith.cmpi ne, %42, %43 : vector<8x1xi32>
      %45 = vector.broadcast %42 : vector<8x1xi32> to vector<8x128xi32>
      %46 = arith.cmpi eq, %26, %45 : vector<8x128xi32>
      %47 = arith.extui %46 : vector<8x128xi1> to vector<8x128xi32>
      %48 = arith.sitofp %47 : vector<8x128xi32> to vector<8x128xf32>
      %49 = arith.mulf %48, %41 : vector<8x128xf32>
      %cst_30 = arith.constant dense<0.000000e+00> : vector<8xf32>
      %50 = vector.multi_reduction <add>, %49, %cst_30 [1] : vector<8x128xf32> to vector<8xf32>
      %51 = vector.shape_cast %50 : vector<8xf32> to vector<8x1xf32>
      %cst_31 = arith.constant 0.000000e+00 : f32
      %52 = vector.broadcast %cst_31 : f32 to vector<8x1xf32>
      %53 = arith.subf %52, %51 : vector<8x1xf32>
      %cst_32 = arith.constant 0.000000e+00 : f32
      %54 = vector.broadcast %cst_32 : f32 to vector<8x1xf32>
      %55 = arith.select %44, %53, %54 : vector<8x1xi1>, vector<8x1xf32>
      %56 = arith.extui %44 : vector<8x1xi1> to vector<8x1xi32>
      %57 = arith.sitofp %56 : vector<8x1xi32> to vector<8x1xf32>
      %cst_33 = arith.constant dense<0.000000e+00> : vector<1xf32>
      %58 = vector.multi_reduction <add>, %57, %cst_33 [0] : vector<8x1xf32> to vector<1xf32>
      %59 = vector.shape_cast %58 : vector<1xf32> to vector<1x1xf32>
      %cst_34 = arith.constant dense<0.000000e+00> : vector<1xf32>
      %60 = vector.multi_reduction <add>, %55, %cst_34 [0] : vector<8x1xf32> to vector<1xf32>
      %61 = vector.shape_cast %60 : vector<1xf32> to vector<1x1xf32>
      %62 = arith.divf %61, %59 : vector<1x1xf32>
      %63 = vector.shape_cast %62 : vector<1x1xf32> to vector<1x1xf32>
      %64 = vector.broadcast %63 : vector<1x1xf32> to vector<1x128xf32>
      %c0_35 = arith.constant 0 : index
      %c0_36 = arith.constant 0 : index
      %65 = vector.load %arg9[%c0_35, %c0_36] : memref<1x128xf32, #tpu.memory_space<vmem>>, vector<1x128xf32>
      tpu.vector_store %arg9[%c0_35, %c0_36], %64 {strides = array<i32>} : memref<1x128xf32, #tpu.memory_space<vmem>>, vector<1x128xf32>,
    } else {
    }
    return
  }
  func.func @transform_0(%arg0: i32) -> (i32, i32) {
    %c0_i32 = arith.constant 0 : i32
    %c0_i32_0 = arith.constant 0 : i32
    %c0_i32_1 = arith.constant 0 : i32
    return %c0_i32, %c0_i32_0 : i32, i32
  }
  func.func @transform_1(%arg0: i32) -> (i32, i32) {
    %c0_i32 = arith.constant 0 : i32
    %c0_i32_0 = arith.constant 0 : i32
    %c0_i32_1 = arith.constant 0 : i32
    return %c0_i32, %c0_i32_0 : i32, i32
  }
  func.func @transform_2(%arg0: i32) -> (i32, i32) {
    %c0_i32 = arith.constant 0 : i32
    %c0_i32_0 = arith.constant 0 : i32
    return %c0_i32, %arg0 : i32, i32
  }
  func.func @transform_3(%arg0: i32) -> (i32, i32) {
    %c0_i32 = arith.constant 0 : i32
    %c0_i32_0 = arith.constant 0 : i32
    return %c0_i32, %arg0 : i32, i32
  }
  func.func @transform_4(%arg0: i32) -> (i32, i32) {
    %c0_i32 = arith.constant 0 : i32
    %c0_i32_0 = arith.constant 0 : i32
    %c0_i32_1 = arith.constant 0 : i32
    return %c0_i32, %c0_i32_0 : i32, i32
  }
  func.func @transform_5(%arg0: i32) -> (i32, i32) {
    %c0_i32 = arith.constant 0 : i32
    %c0_i32_0 = arith.constant 0 : i32
    %c0_i32_1 = arith.constant 0 : i32
    return %c0_i32, %c0_i32_0 : i32, i32
  }
  func.func @transform_6(%arg0: i32) -> (i32, i32) {
    %c0_i32 = arith.constant 0 : i32
    %c0_i32_0 = arith.constant 0 : i32
    %c0_i32_1 = arith.constant 0 : i32
    return %c0_i32, %c0_i32_0 : i32, i32
  }
  func.func @transform_7(%arg0: i32) -> (i32, i32) {
    %c0_i32 = arith.constant 0 : i32
    %c0_i32_0 = arith.constant 0 : i32
    %c0_i32_1 = arith.constant 0 : i32
    return %c0_i32, %c0_i32_0 : i32, i32
  }
  func.func @transform_8(%arg0: i32) -> (i32, i32) {
    %c0_i32 = arith.constant 0 : i32
    %c0_i32_0 = arith.constant 0 : i32
    %c0_i32_1 = arith.constant 0 : i32
    return %c0_i32, %c0_i32_0 : i32, i32
  }
}

</mosaic_0001>

<bundles_post_ra>
// kernel: tpu_custom_call.1
= control target key start
LH: loop header
LB: loop body
LE: loop exit
PB: predicated region body
PF: predicated region fallthrough
CT: control target
= control target key end

     0   :  { %14 = vsyncpa [#allocation4], 0  ;;  %s1598_s0 = inlined_call_operand.vmem [shape: bf16[8,16], index: 0, kind: input, shape index: {}]   ;;  %s1599_s1 = inlined_call_operand.vmem [shape: bf16[64,16], index: 1, kind: input, shape index: {}]   ;;  %s1600_s2 = inlined_call_operand.vmem [shape: bf16[8,768], index: 2, kind: input, shape index: {}]   ;;  %s1601_s3 = inlined_call_operand.hbm [shape: bf16[64,768], index: 3, kind: input, shape index: {}]   ;;  %s1602_s4 = inlined_call_operand.hbm [shape: bf16[128,128], index: 4, kind: input, shape index: {}]   ;;  %s1603_s5 = inlined_call_operand.vmem [shape: f32[1,128], index: 5, kind: input, shape index: {}]   ;;  %s1604_s6 = inlined_call_operand.vmem [shape: s32[8,1], index: 6, kind: input, shape index: {}]   ;;  %s1605_s7 = inlined_call_operand.hbm [shape: f32[8,128], index: 7, kind: output, shape index: {0}]   ;;  %s1606_s8 = inlined_call_operand.hbm [shape: f32[1,128], index: 8, kind: output, shape index: {1}]  }
   0x1   :  { %16 = vsyncpa [#allocation4 + $0x1], 0 }
   0x2   :  { %17 = vsyncpa [#allocation7], 0 }
   0x3   :  { %18 = vsyncpa [#allocation5], 0 }
   0x4   :  { %19 = vsyncpa [#allocation10], 0  ;;  %s1357_s27 = smov 0   ;;  %s1359_s28 = smov 0  }
   0x5   :  { %s1361_s29 = smov 0   ;;  %s1363_s30 = smov 0  }
   0x6 LB: > { %s1376_s9 = sadd.s32 4294967295, %s1296_s30   ;;  %s1379_s10 = sadd.s32 1, %s1296_s30   ;;  %s1296_s30 = sphi %s1363_s30, %s1625_s30   ;;  %s1292_s29 = sphi %s1361_s29, %s1624_s29   ;;  %s1288_s28 = sphi %s1359_s28, %s1623_s28   ;;  %s1284_s27 = sphi %s1357_s27, %s1622_s27  }
   0x7   : > { %s97_s11 = ssub.s32 %s1296_s30, %s1379_s10  ;;  %s100_s12 = sadd.s32 1, %s1292_s29 }
   0x8   : > { %p98_p0 = scmp.eq.s32.totalorder %s97_s11, 0  ;;  %p107_p1 = scmp.ne.s32.totalorder %s1292_s29, %s1288_s28 }
   0x9   : > { %p108_p2 = scmp.eq.s32.totalorder %s1296_s30, 0  ;;  %p113_p3 = scmp.ne.s32.totalorder %s1288_s28, %s1284_s27 }
   0xa   : > { %s1389_s13 = scalar_select %p98_p0, %s1292_s29, %s100_s12  }
   0xb   : > { %p1391_p4 = por %p108_p2, %p107_p1  ;;  %p1607_p5 = scmp.eq.s32.totalorder %s1376_s9, 0 }
   0xc   : > { %1610 = sst [smem:[#allocation15_spill]] %s1389_s13  ;;  %p917_p6 = scmp.ge.s32.totalorder %s1296_s30, 1 }
   0xd   : > { %p229_p7 = scmp.lt.s32.totalorder %s1296_s30, 4  ;;  %p1400_p8 = por %p1607_p5, %p113_p3 }
   0xe   : > { %s1298_s17 = smov [#allocation6]   ;;  %p1063_p13 = scmp.lt.s32.totalorder %s1296_s30, 3 }
   0xf   : > { %s1612_s15 = scalar_select %p1400_p8, 1, 0 }
  0x10   : > { %p1405_p10 = pnand %p917_p6, %p229_p7  ;;  %s247_s18 = sshll.u32 %s1298_s17, 4  ;;  %s248_s18 = int_to_ptr.vmem [resolvable:$true] %s247_s18 }
  0x11   : > { %s276_s20 = sand.u32 1, %s1292_s29   ;;  %s964_s21 = sshll.u32 %s1296_s30, 7 }
  0x12   : > { %s1613_s16 = scalar_select %p1405_p10, 1, 0 }
  0x13   : > { %p1054_p11 = pneg %p1405_p10  ;;  %p1422_p0 = pnand %p1063_p13, %p1391_p4 }
  0x14   : > { %s1159_s23 = scalar_lea.vmem %s248_s18, 1024  ;;  %p1167_p7 = scmp.lt.s32.totalorder %s248_s18, %s248_s18 }
  0x15   : > { %p1413_p12 = pnand %p1054_p11, %p1607_p5  ;;  %p1160_p2 = scmp.ne.s32.totalorder %s248_s18, %s1159_s23 }
  0x16   : > { %p1168_p11 = scmp.lt.s32.totalorder %s1159_s23, %s1159_s23 }
  0x17   : > { %p1150_p1 = pneg %p1413_p12 }
  0x18   : > { %p1169_p9 = por %p1168_p11, %p1167_p7 }
  0x19   : > { %p1162_p3 = pnand %p1160_p2, %p1150_p1 }
  0x1b   : > { %p1163_p6 = pneg %p1162_p3 }
  0x1d   : > { %p1170_p5 = pnand %p1169_p9, %p1163_p6 }
  0x1f   : > { %1173 = shalt.err (!%p1170_p5)
}
  0x20   : > { %s1299_s24 = smov 64   ;;  %s1300_s25 = smov 4  }
  0x21   : > { %1057 = dma.hbm_to_vmem [thread:$0]  (!%p1413_p12), %s1602_s4, 1024, %s248_s18, [#allocation7], %s1299_s24, %s1299_s24, %s1300_s25  }
  0x22   : > { %s920_s30 = sshll.u32 %s276_s20, 6  ;;  %s1436_s14 = scalar_lea.hbm %s1601_s3, %s964_s21 }
  0x23   : > { %s280_s17 = scalar_lea.vmem [#allocation3], %s920_s30  ;;  %s1440_s13 = scalar_lea.sflag [#allocation4], %s276_s20 }
  0x24   : > { %s287_s23 = sshll.u32 %s280_s17, 4  ;;  %s1174_s19 = scalar_lea.hbm %s1436_s14, 1024  ;;  %s1438_s23 = int_to_ptr.vmem [resolvable:$true] %s287_s23 }
  0x25   : > { %p1175_p4 = scmp.ne.s32.totalorder %s1436_s14, %s1174_s19  ;;  %p1176_p5 = pneg %p1422_p0 }
  0x26   : > { %s1179_s21 = scalar_lea.hbm %s1601_s3, 3072  ;;  %p1180_p13 = scmp.lt.s32.totalorder %s1436_s14, %s1601_s3 }
  0x27   : > { %p1177_p9 = pnand %p1176_p5, %p1175_p4  ;;  %p1181_p1 = scmp.lt.s32.totalorder %s1179_s21, %s1174_s19 }
  0x29   : > { %p1178_p12 = pneg %p1177_p9  ;;  %p1182_p2 = por %p1181_p1, %p1180_p13 }
  0x2b   : > { %p1183_p3 = pnand %p1182_p2, %p1178_p12 }
  0x2d   : > { %1186 = shalt.err (!%p1183_p3)
}
  0x2e   : > { %s1187_s20 = scalar_lea.vmem %s1438_s23, 1024  ;;  %s1301_s27 = smov [#allocation3]  }
  0x2f   : > { %p1188_p6 = scmp.ne.s32.totalorder %s1438_s23, %s1187_s20  ;;  %s1192_s30 = sshll.u32 %s1301_s27, 4  ;;  %s1193_s30 = int_to_ptr.vmem [resolvable:$false] %s1192_s30 }
  0x30   : > { %s1194_s11 = scalar_lea.vmem %s1193_s30, 2048  ;;  %p1195_p4 = scmp.lt.s32.totalorder %s1438_s23, %s1193_s30 }
  0x31   : > { %p1190_p7 = pnand %p1188_p6, %p1176_p5  ;;  %p1196_p9 = scmp.lt.s32.totalorder %s1194_s11, %s1187_s20 }
  0x33   : > { %p1191_p11 = pneg %p1190_p7  ;;  %p1197_p8 = por %p1196_p9, %p1195_p4 }
  0x35   : > { %p1198_p10 = pnand %p1197_p8, %p1191_p11 }
  0x37   : > { %1201 = shalt.err (!%p1198_p10)
}
  0x38   : > { %s1302_s12 = smov 384   ;;  %s1303_s17 = smov 128  }
  0x39   : > { %s1304_s19 = smov 8   ;;  %p1616_p5 = scmp.ne.s32.totalorder %s1613_s16, 0 }
  0x3a   : > { %1061 = dma.hbm_to_vmem [thread:$0]  (!%p1422_p0), %s1436_s14, 1024, %s1438_s23, %s1440_s13, %s1302_s12, %s1303_s17, %s1304_s19  }
  0x3b   : > { %299 = sbr.rel (%p1616_p5) target bundleno = 1358 (0x54e), region = 48  ;;  %s301_s18 = sand.u32 (!%p1616_p5), 1, %s1288_s28  }
  0x3c   : > { %s924_s24 = sshll.u32 (!%p1616_p5), %s301_s18, 6  ;;  %s302_s21 = scalar_lea.sflag (!%p1616_p5), [#allocation4], %s301_s18 }
  0x3d   : > { %s1464_s25 = scalar_lea.vmem (!%p1616_p5), [#allocation3], %s924_s24  ;;  %p1617_p8 = scmp.ne.s32.totalorder (!%p1616_p5), %s1612_s15, 0 }
  0x40   : > { %1267 = dma.done.wait (%p1617_p8), %s302_s21, 1024  }
  0x41   : > { %1269 = vsyncadd (%p1617_p8), %s302_s21, 4294966272  ;;  %p1618_p10 = scmp.eq.s32.totalorder %s1376_s9, 0 }
  0x43   : > { %1271 = dma.done.wait (%p1618_p10), [#allocation7], 1024   ;;  %p1619_p0 = pmov %p1618_p10 }
  0x44   : > { %s926_s13 = sshll.u32 %s1376_s9, 1  ;;  %p1620_p13 = scmp.ne.s32.totalorder %s1376_s9, 0 }
  0x45   : > { %1273 = vsyncadd (%p1619_p0), [#allocation7], 4294966272  ;;  %p343_p12 = scmp.lt.s32.totalorder %s926_s13, 5 }
  0x46   : > { %353 = sbr.rel (%p1620_p13) target bundleno = 77 (0x4d), region = 60 }
  0x47   : > { %s1627_s13 = smov (!%p343_p12, %s926_s13), 5 }
  0x48   : > { %s927_s16 = sshll.u32 %s1627_s13, 2 }
  0x49   : > { %s346_s23 = scalar_lea.vmem %s1600_s2, %s927_s16 }
  0x4b   : > { %vm354_vm0 = vcmask 523264   ;;  %v1305_v0 = vmov 0.0  }
  0x4c   : > { %355 = vst.msk [vmem:[#allocation2] sm:$0xff] %vm354_vm0, %v1305_v0 }
  0x4d PF: > { %v1114_v1 = vld [vmem:[%s1464_s25 + $0x34] ss:$8 sps:$4 sm:$0xff]   ;;  %v1116_v2 = vld [vmem:[%s1464_s25 + $0x30] ss:$8 sps:$4 sm:$0xff]   ;;  %v1117_v3 = vld [vmem:[%s1464_s25 + $0x24] ss:$8 sps:$4 sm:$0xff]  }
  0x4e   : > { %421 = vmatprep.subr.bf16.mxu0 %v1114_v1  ;;  %v357_v4 = vld [vmem:[%s346_s23] sm:$0xff]  ;;  %v1119_v6 = vld [vmem:[%s1464_s25 + $0x20] ss:$8 sps:$4 sm:$0xff]   ;;  %v1123_v9 = vld [vmem:[%s1464_s25 + $0x4] ss:$8 sps:$4 sm:$0xff]   ;;  %vm454_vm1 = vcmask 523264  }
  0x4f   : > { %422 = vmatpush1.bf16.xpose.msra.mxu0 %v1116_v2  ;;  %v930_v5 = vcombine.high %v357_v4, %v357_v4  ;;  %v1120_v7 = vld [vmem:[%s1464_s25 + $0x14] ss:$8 sps:$4 sm:$0xff]   ;;  %v1122_v8 = vld [vmem:[%s1464_s25 + $0x10] ss:$8 sps:$4 sm:$0xff]   ;;  %v1125_v10 = vld [vmem:[%s1464_s25] ss:$8 sps:$4 sm:$0xff]   ;;  %v929_v11 = vcombine.low %v357_v4, %v357_v4 }
  0x50   : > { %423 = vmatprep.subr.bf16.mxu0 %v1117_v3  ;;  %p939_p1 = scmp.ne.s32.totalorder %s1376_s9, 2 }
  0x51   : > { %445 = vmatprep.mubr.bf16.mxu0 %v930_v5  ;;  %s1308_s30 = smov (!%p939_p1), 64  }
  0x53   : > { %v356_v12 = vld [vmem:[#allocation2] sm:$0xff] }
  0x57   : > { %424 = vmatpush1.bf16.xpose.msra.mxu0 %v1119_v6 }
  0x58   : > { %425 = vmatprep.subr.bf16.mxu0 %v1120_v7 }
  0x5f   : > { %426 = vmatpush1.bf16.xpose.msra.mxu0 %v1122_v8 }
  0x60   : > { %427 = vmatprep.subr.bf16.mxu0 %v1123_v9 }
  0x67   : > { %428 = vmatpush1.bf16.xpose.msra.mxu0 %v1125_v10 }
  0x6e   : > { %446 = vmatmul.mubr.bf16.vlgmr.msra.gmra.mxu0 %v929_v11 }
 0x12e   : > { %v447_v13 = vpop.f32.mrf.mxu0 }
 0x12f   : > { %v453_v14 = vadd.f32 %v447_v13, %v356_v12 }
 0x130   : > { %v449_v15 = vpop.f32.mrf.mxu0  ;;  %459 = sbr.rel (%p939_p1) target bundleno = 1330 (0x532), region = 64 }
 0x131   : > { %455 = vst.msk [vmem:[#allocation2] sm:$0xff] %vm454_vm1, %v453_v14 }
 0x132   : > { %v450_v16 = vpop.f32.mrf.mxu0 }
 0x134   : > { %v451_v17 = vpop.f32.mrf.mxu0 }
 0x135   : > { %v1130_v18 = vld [vmem:[%s1599_s1 + $0x18] sm:$0xff]   ;;  %v1306_v19 = vmov 0.0   ;;  %vm489_vm2 = vcmask 130048   ;;  %v1131_v21 = vld [vmem:[%s1599_s1 + $0x10] sm:$0xff]   ;;  %vm1307_vm3 = vmmov 0   ;;  %v1134_v22 = vld [vmem:[#allocation6 + $0x38] sm:$0xff]   ;;  %v762_v7 = vlaneseq }
 0x136   : > { %988 = vmatprep.subr.bf16.mxu0 %v1306_v19  ;;  %1000 = vmatprep.subr.bf16.mxu1 %v1306_v19  ;;  %v503_v20 = vsel %vm489_vm2, %v1130_v18, 0  ;;  %v1135_v23 = vld [vmem:[#allocation6 + $0x30] sm:$0xff]   ;;  %v1136_v24 = vld [vmem:[#allocation6 + $0x28] sm:$0xff]   ;;  %v500_v25 = vsel %vm489_vm2, %v1131_v21, 0  ;;  %v1137_v26 = vld [vmem:[#allocation6 + $0x20] sm:$0xff]   ;;  %v712_v36 = vsel %vm454_vm1, %v1134_v22, 0 }
 0x137   : > { %989 = vmatpush3.bf16.xpose.msra.mxu0 %v503_v20  ;;  %996 = vmatprep.mubr.msk.bf16.mxu0 %vm1307_vm3, %v1306_v19  ;;  %v1138_v27 = vld [vmem:[#allocation6 + $0x18] sm:$0xff]   ;;  %v1132_v28 = vld [vmem:[%s1599_s1 + $0x8] sm:$0xff]   ;;  %v1139_v29 = vld [vmem:[#allocation6 + $0x10] sm:$0xff]   ;;  %v709_v37 = vsel %vm454_vm1, %v1135_v23, 0  ;;  %v706_v38 = vsel %vm454_vm1, %v1136_v24, 0  ;;  %v703_v39 = vsel %vm454_vm1, %v1137_v26, 0 }
 0x138   : > { %990 = vmatprep.subr.bf16.mxu0 %v1306_v19  ;;  %1016 = vmatprep.mubr.msk.bf16.mxu1 %vm1307_vm3, %v1306_v19  ;;  %v1140_v30 = vld [vmem:[#allocation6 + $0x8] sm:$0xff]   ;;  %v497_v31 = vsel %vm489_vm2, %v1132_v28, 0  ;;  %v1141_v32 = vld [vmem:[#allocation6] sm:$0xff]   ;;  %v1133_v33 = vld [vmem:[%s1599_s1] sm:$0xff]   ;;  %v700_v40 = vsel %vm454_vm1, %v1138_v27, 0  ;;  %v697_v41 = vsel %vm454_vm1, %v1139_v29, 0 }
 0x139   : > { %618 = vrot.lane.b32.xlu0 %v1134_v22, %s1308_s30  ;;  %614 = vrot.lane.b32.xlu1 %v1136_v24, %s1308_s30  ;;  %v494_v34 = vsel %vm489_vm2, %v1133_v33, 0  ;;  %v460_v35 = vld [vmem:[%s1598_s0] sm:$0xf]  ;;  %v694_v42 = vsel %vm454_vm1, %v1140_v30, 0  ;;  %v691_v43 = vsel %vm454_vm1, %v1141_v32, 0  ;;  %v763_v8 = vand.u32 127, %v762_v7 }
 0x13a   : > { %v545_v60 = vld [vmem:[#allocation2] sm:$0xff]  ;;  %v1309_v18 = vmov 0   ;;  %vm792_vm7 = vcmask 7168  }
 0x13b   : > { %v563_v61 = vpack.c.bf16 %v545_v60, %v545_v60  ;;  %v955_v10 = vld [vmem:[%s1603_s5] ss:$0 sm:$0xff]  ;;  %vm764_vm4 = vcmp.lt.s32.totalorder %v763_v8, 4  ;;  %1128 = vset.pattern.permute.xlu0 %v1309_v18  ;;  %1129 = vset.pattern.permute.xlu1 %v1309_v18 }
 0x13c   : > { %v777_v17 = vld [vmem:[%s1604_s6] sm:$0xff] }
 0x13d   : > { %616 = vrot.lane.b32.xlu0 %v1135_v23, %s1308_s30  ;;  %612 = vrot.lane.b32.xlu1 %v1137_v26, %s1308_s30  ;;  %vm778_vm6 = vcmp.ne.s32.totalorder %v777_v17, 4294967196 }
 0x13f   : > { %991 = vmatpush3.bf16.xpose.msra.mxu0 %v500_v25 }
 0x140   : > { %992 = vmatprep.subr.bf16.mxu0 %v1306_v19 }
 0x141   : > { %610 = vrot.lane.b32.xlu0 %v1138_v27, %s1308_s30  ;;  %608 = vrot.lane.b32.xlu1 %v1139_v29, %s1308_s30 }
 0x145   : > { %606 = vrot.lane.b32.xlu0 %v1140_v30, %s1308_s30  ;;  %604 = vrot.lane.b32.xlu1 %v1141_v32, %s1308_s30 }
 0x147   : > { %993 = vmatpush3.bf16.xpose.msra.mxu0 %v497_v31  ;;  %v957_v31 = vsel %vm778_vm6, 1.0, %v1306_v19 }
 0x148   : > { %994 = vmatprep.subr.bf16.mxu0 %v1306_v19  ;;  %v793_v32 = vsel %vm792_vm7, %v957_v31, 0.0 }
 0x149   : > { %v794_v33 = vrot.slane %v793_v32, 4 }
 0x14f   : > { %995 = vmatpush3.bf16.xpose.msra.mxu0 %v494_v34  ;;  %v795_v34 = vadd.f32 %v794_v33, %v793_v32 }
 0x150   : > { %1020 = vmatprep.subr.bf16.mxu0 %v1306_v19 }
 0x156   : > { %997 = vmatmul.mubr.msk.bf16.vlgmr.msra.gmra.mxu0 %vm489_vm2, %v460_v35  ;;  %v796_v35 = vrot.slane %v795_v34, 2 }
 0x157   : > { %1021 = vmatpush3.bf16.xpose.msra.mxu0 %v712_v36  ;;  %1036 = vmatprep.mubr.msk.bf16.mxu0 %vm1307_vm3, %v1306_v19 }
 0x158   : > { %1022 = vmatprep.subr.bf16.mxu0 %v1306_v19  ;;  %v797_v36 = vadd.f32 %v796_v35, %v795_v34 }
 0x15f   : > { %1023 = vmatpush3.bf16.xpose.msra.mxu0 %v709_v37  ;;  %v798_v37 = vrot.slane %v797_v36, 1 }
 0x160   : > { %1024 = vmatprep.subr.bf16.mxu0 %v1306_v19 }
 0x167   : > { %1025 = vmatpush3.bf16.xpose.msra.mxu0 %v706_v38  ;;  %v799_v38 = vadd.f32 %v798_v37, %v797_v36 }
 0x168   : > { %1026 = vmatprep.subr.bf16.mxu0 %v1306_v19 }
 0x16f   : > { %1027 = vmatpush3.bf16.xpose.msra.mxu0 %v703_v39 }
 0x170   : > { %1028 = vmatprep.subr.bf16.mxu0 %v1306_v19 }
 0x177   : > { %1029 = vmatpush3.bf16.xpose.msra.mxu0 %v700_v40 }
 0x178   : > { %1030 = vmatprep.subr.bf16.mxu0 %v1306_v19 }
 0x17f   : > { %1031 = vmatpush3.bf16.xpose.msra.mxu0 %v697_v41 }
 0x180   : > { %1032 = vmatprep.subr.bf16.mxu0 %v1306_v19 }
 0x187   : > { %1033 = vmatpush3.bf16.xpose.msra.mxu0 %v694_v42 }
 0x188   : > { %1034 = vmatprep.subr.bf16.mxu0 %v1306_v19 }
 0x18f   : > { %1035 = vmatpush3.bf16.xpose.msra.mxu0 %v691_v43 }
 0x1ab   : > { %v619_v44 = vpop.permute.xlu0 %618  ;;  %v615_v48 = vpop.permute.xlu1 %614 }
 0x1ac   : > { %v645_v45 = vsel %vm454_vm1, %v619_v44, 0  ;;  %v639_v49 = vsel %vm454_vm1, %v615_v48, 0 }
 0x1ad   : > { %1001 = vmatpush3.bf16.xpose.msra.mxu1 %v645_v45 }
 0x1ae   : > { %1002 = vmatprep.subr.bf16.mxu1 %v1306_v19 }
 0x1af   : > { %v617_v46 = vpop.permute.xlu0 %616  ;;  %v613_v50 = vpop.permute.xlu1 %612 }
 0x1b0   : > { %v642_v47 = vsel %vm454_vm1, %v617_v46, 0  ;;  %v636_v51 = vsel %vm454_vm1, %v613_v50, 0 }
 0x1b3   : > { %v611_v52 = vpop.permute.xlu0 %610  ;;  %v609_v54 = vpop.permute.xlu1 %608 }
 0x1b4   : > { %v633_v53 = vsel %vm454_vm1, %v611_v52, 0  ;;  %v630_v55 = vsel %vm454_vm1, %v609_v54, 0 }
 0x1b5   : > { %1003 = vmatpush3.bf16.xpose.msra.mxu1 %v642_v47 }
 0x1b6   : > { %1004 = vmatprep.subr.bf16.mxu1 %v1306_v19 }
 0x1b7   : > { %v607_v56 = vpop.permute.xlu0 %606  ;;  %v605_v58 = vpop.permute.xlu1 %604 }
 0x1b8   : > { %v627_v57 = vsel %vm454_vm1, %v607_v56, 0  ;;  %v624_v59 = vsel %vm454_vm1, %v605_v58, 0 }
 0x1bd   : > { %1005 = vmatpush3.bf16.xpose.msra.mxu1 %v639_v49 }
 0x1be   : > { %1006 = vmatprep.subr.bf16.mxu1 %v1306_v19 }
 0x1c5   : > { %1007 = vmatpush3.bf16.xpose.msra.mxu1 %v636_v51 }
 0x1c6   : > { %1008 = vmatprep.subr.bf16.mxu1 %v1306_v19 }
 0x1cd   : > { %1009 = vmatpush3.bf16.xpose.msra.mxu1 %v633_v53 }
 0x1ce   : > { %1010 = vmatprep.subr.bf16.mxu1 %v1306_v19 }
 0x1d5   : > { %1011 = vmatpush3.bf16.xpose.msra.mxu1 %v630_v55 }
 0x1d6   : > { %1012 = vmatprep.subr.bf16.mxu1 %v1306_v19 }
 0x1dd   : > { %1013 = vmatpush3.bf16.xpose.msra.mxu1 %v627_v57 }
 0x1de   : > { %1014 = vmatprep.subr.bf16.mxu1 %v1306_v19 }
 0x1e5   : > { %1015 = vmatpush3.bf16.xpose.msra.mxu1 %v624_v59 }
 0x1ec   : > { %1017 = vmatmul.mubr.msk.bf16.vlgmr.msra.gmra.mxu1 %vm454_vm1, %v563_v61 }
 0x216   : > { %v539_v62 = vpop.f32.mrf.mxu0 }
 0x217   : > { %v562_v63 = vpack.c.bf16 %v539_v62, %v539_v62 }
 0x218   : > { %v998_v0 = vpop.f32.mrf.mxu0 }
 0x219   : > { %1037 = vmatmul.mubr.msk.bf16.vlgmr.msra.gmra.mxu0 %vm454_vm1, %v562_v63 }
 0x21a   : > { %v542_v1 = vpop.f32.mrf.mxu0 }
 0x21c   : > { %v999_v2 = vpop.f32.mrf.mxu0 }
 0x2ac   : > { %v681_v3 = vpop.f32.mrf.mxu1 }
 0x2ae   : > { %v1018_v4 = vpop.f32.mrf.mxu1 }
 0x2b0   : > { %v684_v5 = vpop.f32.mrf.mxu1 }
 0x2b2   : > { %v1019_v6 = vpop.f32.mrf.mxu1 }
 0x2d9   : > { %v748_v9 = vpop.f32.mrf.mxu0 }
 0x2da   : > { %v749_v11 = vadd.f32 %v748_v9, %v681_v3 }
 0x2db   : > { %v1038_v12 = vpop.f32.mrf.mxu0 }
 0x2dc   : > { %v761_v13 = vadd.f32 %v955_v10, %v749_v11 }
 0x2dd   : > { %v751_v14 = vpop.f32.mrf.mxu0 }
 0x2de   : > { %v765_v15 = vsel %vm764_vm4, %v761_v13, -1e+30 }
 0x2df   : > { %767 = vmax.xlane.f32.xlu0 %v765_v15  ;;  %766 = vst [vmem:[#allocation8] sm:$0xff] %v765_v15  ;;  %v1039_v16 = vpop.f32.mrf.mxu0 }
 0x2f5   : > { %780 = vperm.xlu0 %1128, %v777_v17  }
 0x368   : > { %v768_v20 = vpop.xlane.xlu0 %767 }
 0x369   : > { %v769_v21 = vsub.f32 %v765_v15, %v768_v20 }
 0x36b   : > { %v770_v22 = vmul.f32 1.442695, %v769_v21 }
 0x36d   : > { %1142 = vpow2.f32 %v770_v22 }
 0x370   : > { %v781_v25 = vpop.permute.xlu0 %780 }
 0x371   : > { %vm782_vm5 = vcmp.eq.s32.totalorder %v763_v8, %v781_v25 }
 0x372   : > { %v956_v28 = vsel %vm782_vm5, 1.0, %v1306_v19 }
 0x37a   : > { %v1143_v23 = vpop.eup %1142 }
 0x37b   : > { %772 = vadd.xlane.f32.xlu1 %v1143_v23 }
 0x404   : > { %v773_v24 = vpop.xlane.xlu1 %772 }
 0x405   : > { %1144 = vlog2.f32 %v773_v24 }
 0x406   : > { %1146 = vrcp.f32 %v799_v38 }
 0x412   : > { %v1145_v26 = vpop.eup %1144 }
 0x413   : > { %v775_v27 = vmul.f32 0.6931472, %v1145_v26  ;;  %v1147_v48 = vpop.eup %1146 }
 0x415   : > { %v776_v29 = vsub.f32 %v769_v21, %v775_v27 }
 0x417   : > { %v785_v30 = vmul.f32 %v956_v28, %v776_v29 }
 0x419   : > { %786 = vadd.xlane.f32.xlu1 %v785_v30 }
 0x4a2   : > { %v787_v39 = vpop.xlane.xlu1 %786 }
 0x4a3   : > { %v788_v40 = vsub.f32 0.0, %v787_v39 }
 0x4a5   : > { %v789_v41 = vsel %vm778_vm6, %v788_v40, 0.0 }
 0x4a6   : > { %v800_v42 = vsel %vm792_vm7, %v789_v41, 0.0 }
 0x4a7   : > { %v801_v43 = vrot.slane %v800_v42, 4 }
 0x4a9   : > { %v802_v44 = vadd.f32 %v801_v43, %v800_v42 }
 0x4ab   : > { %v803_v45 = vrot.slane %v802_v44, 2 }
 0x4ad   : > { %v804_v46 = vadd.f32 %v803_v45, %v802_v44 }
 0x4af   : > { %v805_v47 = vrot.slane %v804_v46, 1 }
 0x4b1   : > { %v806_v19 = vadd.f32 %v805_v47, %v804_v46 }
 0x4b3   : > { %v808_v49 = vmul.f32 %v1147_v48, %v806_v19 }
 0x4b5   : > { %811 = vperm.xlu1 %1129, %v808_v49  }
 0x530   : > { %v812_v50 = vpop.permute.xlu1 %811 }
 0x531   : > { %814 = vst [vmem:[#allocation9] sm:$0x1] %v812_v50 }
 0x532 PF: > { %p1065_p2 = scmp.eq.s32.totalorder %s1376_s9, 2  ;;  %s1310_s22 = smov [#allocation8]  }
 0x533   : > { %s822_s14 = sshll.u32 %s1310_s22, 4  ;;  %s1311_s23 = smov [#allocation9]   ;;  %s823_s14 = int_to_ptr.vmem [resolvable:$true] %s822_s14 }
 0x534   : > { %s833_s15 = sshll.u32 %s1311_s23, 4  ;;  %s1202_s26 = scalar_lea.vmem %s823_s14, 128  ;;  %s834_s15 = int_to_ptr.vmem [resolvable:$true] %s833_s15 }
 0x535   : > { %p1203_p3 = scmp.ne.s32.totalorder %s823_s14, %s1202_s26  ;;  %p1209_p11 = scmp.lt.s32.totalorder %s823_s14, %s823_s14 }
 0x536   : > { %p1210_p4 = scmp.lt.s32.totalorder %s1202_s26, %s1202_s26 }
 0x537   : > { %p1204_p6 = pnand %p1203_p3, %p1065_p2 }
 0x538   : > { %p1211_p9 = por %p1210_p4, %p1209_p11 }
 0x539   : > { %p1205_p7 = pneg %p1204_p6 }
 0x53b   : > { %p1212_p5 = pnand %p1211_p9, %p1205_p7 }
 0x53d   : > { %1215 = shalt.err (!%p1212_p5)
}
 0x53e   : > { %1047 = dma.vmem_to_hbm [thread:$0]  (%p1065_p2), %s823_s14, 128, %s1605_s7, [#allocation5]  }
 0x53f   : > { %s1226_s30 = scalar_lea.vmem %s834_s15, 16  ;;  %s1232_s11 = scalar_lea.vmem %s834_s15, 32 }
 0x540   : > { %p1227_p8 = scmp.ne.s32.totalorder %s834_s15, %s1226_s30  ;;  %p1233_p12 = scmp.lt.s32.totalorder %s834_s15, %s834_s15 }
 0x541   : > { %p1234_p13 = scmp.lt.s32.totalorder %s1232_s11, %s1226_s30 }
 0x542   : > { %p1228_p10 = pnand %p1227_p8, %p1065_p2 }
 0x543   : > { %p1235_p1 = por %p1234_p13, %p1233_p12 }
 0x544   : > { %p1229_p0 = pneg %p1228_p10 }
 0x546   : > { %p1236_p3 = pnand %p1235_p1, %p1229_p0 }
 0x548   : > { %1239 = shalt.err (!%p1236_p3)
}
 0x549   : > { %1049 = dma.vmem_to_hbm [thread:$0]  (%p1065_p2), %s834_s15, 16, %s1606_s8, [#allocation10]  }
 0x54a   : > { %1275 = dma.done.wait (%p1065_p2), [#allocation5], 128  }
 0x54b   : > { %1277 = vsyncadd (%p1065_p2), [#allocation5], 4294967168 }
 0x54c   : > { %1279 = dma.done.wait (%p1065_p2), [#allocation10], 16  }
 0x54d   : > { %1281 = vsyncadd (%p1065_p2), [#allocation10], 4294967280 }
 0x54e PF: > { %s1621_s19 = sld [smem:[#allocation15_spill]]  ;;  %p22_p6 = scmp.ge.s32.totalorder %s1379_s10, 5  }
 0x54f   : > { %s1622_s27 = smov %s1288_s28  ;;  %s1623_s28 = smov %s1292_s29 }
 0x550   : > { %s1625_s30 = smov %s1379_s10  ;;  %24 = sbr.rel (!%p22_p6) target bundleno = 6 (0x6), region = 108 }
 0x554   : > { %s1624_s29 = smov %s1621_s19 }
 0x555   :  { %850 = vsyncpa [#allocation4], 1 }
 0x556   :  { %852 = vsyncpa [#allocation4 + $0x1], 1 }
 0x557   :  { %853 = vsyncpa [#allocation7], 1 }
 0x558   :  { %854 = vsyncpa [#allocation5], 1 }
 0x559   :  { %856 = vsyncpa [#allocation5 + $0x1], 1 }
 0x55a   :  { %857 = vsyncpa [#allocation10], 1 }

</bundles_post_ra>
